<compile_context>
chip_gen: v6e
topology: v6e:2x2x1
jax: 0.10.0
libtpu: 0.0.40
codegen_flags: <defaults>
</compile_context>

<pallas_src>
import functools

import jax
import jax.numpy as jnp
from jax.experimental import pallas as pl
from jax.experimental.pallas import tpu as pltpu


def _round_up(x, m):
    return (x + m - 1) // m * m


def _mlp_kernel(x_ref, w1_ref, b1_ref, w2_ref, b2_ref, w3_ref, b3_ref, o_ref):
    # fc1: (TB, D_in)bf16 @ (D_in, 64)bf16 -> f32 accumulate, bias + ReLU in f32.
    h1 = jnp.dot(x_ref[...], w1_ref[...], preferred_element_type=jnp.float32)
    h1 = jnp.maximum(h1 + b1_ref[...], 0.0)
    # fc2: (TB, 64) @ (64, 32); re-cast activation to bf16 to stay on the fast MXU path.
    h2 = jnp.dot(h1.astype(jnp.bfloat16), w2_ref[...],
                 preferred_element_type=jnp.float32)
    h2 = jnp.maximum(h2 + b2_ref[...], 0.0)
    # fc3: (TB, 32) @ (32, 16), no activation.
    h3 = jnp.dot(h2.astype(jnp.bfloat16), w3_ref[...],
                 preferred_element_type=jnp.float32)
    o_ref[...] = (h3 + b3_ref[...]).astype(o_ref.dtype)


@functools.partial(jax.jit, static_argnames=("block_batch",))
def mlp_pallas(x, w1, b1, w2, b2, w3, b3, *, block_batch=2048):
    """x: (B, D_in) f32. Weights already (in, out). Biases (1, out) f32."""
    B, d_in = x.shape
    h1_dim = w1.shape[1]
    h2_dim = w2.shape[1]
    out_dim = w3.shape[1]

    # Batch tile: at most `block_batch` rows, always a multiple of 8 (sublane).
    tb = min(block_batch, _round_up(B, 8))
    b_pad = _round_up(B, tb)
    num_tiles = b_pad // tb

    # Cast streaming input + weights to bf16; biases stay f32 for the epilogue.
    xb = x.astype(jnp.bfloat16)
    if b_pad != B:
        xb = jnp.pad(xb, ((0, b_pad - B), (0, 0)))
    w1b = w1.astype(jnp.bfloat16)
    w2b = w2.astype(jnp.bfloat16)
    w3b = w3.astype(jnp.bfloat16)

    # Weights/biases: constant block index -> resident in VMEM across the grid.
    const = lambda shape: pl.BlockSpec(shape, lambda i: (0,) * len(shape))

    flops = 2 * b_pad * (d_in * h1_dim + h1_dim * h2_dim + h2_dim * out_dim)
    weight_bytes = 2 * (d_in * h1_dim + h1_dim * h2_dim + h2_dim * out_dim) \
        + 4 * (h1_dim + h2_dim + out_dim)
    bytes_accessed = b_pad * d_in * 2 + b_pad * out_dim * 4 + weight_bytes

    out = pl.pallas_call(
        _mlp_kernel,
        out_shape=jax.ShapeDtypeStruct((b_pad, out_dim), jnp.float32),
        grid=(num_tiles,),
        in_specs=[
            pl.BlockSpec((tb, d_in), lambda i: (i, 0)),   # streamed per batch tile
            const(w1b.shape), const(b1.shape),
            const(w2b.shape), const(b2.shape),
            const(w3b.shape), const(b3.shape),
        ],
        out_specs=pl.BlockSpec((tb, out_dim), lambda i: (i, 0)),
        compiler_params=pltpu.CompilerParams(
            dimension_semantics=("parallel",)),
        cost_estimate=pl.CostEstimate(
            flops=int(flops), transcendentals=0,
            bytes_accessed=int(bytes_accessed)),
    )(xb, w1b, b1, w2b, b2, w3b, b3)

    return out[:B] if b_pad != B else out


def init_linear_params(key, in_features, out_features):
    """Deterministic init mimicking PyTorch nn.Linear default (uniform +/- 1/sqrt(fan_in))."""
    kw, kb = jax.random.split(key)
    bound = 1.0 / jnp.sqrt(jnp.float32(in_features))
    # Stored directly as (in, out) — i.e. already "transposed" relative to PyTorch.
    w = jax.random.uniform(kw, (in_features, out_features), jnp.float32, -bound, bound)
    b = jax.random.uniform(kb, (1, out_features), jnp.float32, -bound, bound)
    return w, b


def mlp_reference(x, w1, b1, w2, b2, w3, b3):
    h = jnp.maximum(x @ w1 + b1, 0.0)
    h = jnp.maximum(h @ w2 + b2, 0.0)
    return h @ w3 + b3


if __name__ == "__main__":
    key = jax.random.PRNGKey(0)
    k_x, k1, k2, k3, k_big = jax.random.split(key, 5)

    batch = 8
    input_size = 32

    w1, b1 = init_linear_params(k1, input_size, 64)
    w2, b2 = init_linear_params(k2, 64, 32)
    w3, b3 = init_linear_params(k3, 32, 16)

    # Small-shape check (single grid step).
    x = jax.random.normal(k_x, (batch, input_size), jnp.float32)
    out = jax.block_until_ready(mlp_pallas(x, w1, b1, w2, b2, w3, b3))
    ref = mlp_reference(x, w1, b1, w2, b2, w3, b3)
    assert out.shape == (batch, 16)
    assert jnp.allclose(out, ref, atol=3e-2, rtol=3e-2)  # bf16 matmul tolerance

    # Multi-tile check: exercises grid pipelining, padding + tail slicing.
    x_big = jax.random.normal(k_big, (2000, input_size), jnp.float32)
    out_big = jax.block_until_ready(
        mlp_pallas(x_big, w1, b1, w2, b2, w3, b3, block_batch=512))
    ref_big = mlp_reference(x_big, w1, b1, w2, b2, w3, b3)
    assert out_big.shape == (2000, 16)
    assert jnp.allclose(out_big, ref_big, atol=3e-2, rtol=3e-2)

    print("KERNEL_OK")
</pallas_src>

<mosaic_0001>
module attributes {stable_mosaic.version = 11 : i64} {
  func.func @_mlp_kernel(%arg0: i32, %arg1: memref<8x32xbf16, #tpu.memory_space<vmem>>, %arg2: memref<32x64xbf16, #tpu.memory_space<vmem>>, %arg3: memref<1x64xf32, #tpu.memory_space<vmem>>, %arg4: memref<64x32xbf16, #tpu.memory_space<vmem>>, %arg5: memref<1x32xf32, #tpu.memory_space<vmem>>, %arg6: memref<32x16xbf16, #tpu.memory_space<vmem>>, %arg7: memref<1x16xf32, #tpu.memory_space<vmem>>, %arg8: memref<8x16xf32, #tpu.memory_space<vmem>>) attributes {dimension_semantics = [#tpu.dimension_semantics<parallel>], iteration_bounds = array<i64: 1>, scalar_prefetch = 0 : i64, scratch_operands = 0 : i64, tpu.core_type = #tpu.core_type<tc>, window_params = [{transform_indices = @transform_0, window_bounds = array<i64: 8, 32>}, {pipeline_mode = #tpu.pipeline_mode<synchronous>, transform_indices = @transform_1, window_bounds = array<i64: 32, 64>}, {pipeline_mode = #tpu.pipeline_mode<synchronous>, transform_indices = @transform_2, window_bounds = array<i64: 1, 64>}, {pipeline_mode = #tpu.pipeline_mode<synchronous>, transform_indices = @transform_3, window_bounds = array<i64: 64, 32>}, {pipeline_mode = #tpu.pipeline_mode<synchronous>, transform_indices = @transform_4, window_bounds = array<i64: 1, 32>}, {pipeline_mode = #tpu.pipeline_mode<synchronous>, transform_indices = @transform_5, window_bounds = array<i64: 32, 16>}, {pipeline_mode = #tpu.pipeline_mode<synchronous>, transform_indices = @transform_6, window_bounds = array<i64: 1, 16>}, {transform_indices = @transform_7, window_bounds = array<i64: 8, 16>}]} {
    %c0 = arith.constant 0 : index
    %c0_0 = arith.constant 0 : index
    %0 = vector.load %arg1[%c0, %c0_0] : memref<8x32xbf16, #tpu.memory_space<vmem>>, vector<8x32xbf16>
    %c0_1 = arith.constant 0 : index
    %c0_2 = arith.constant 0 : index
    %1 = vector.load %arg2[%c0_1, %c0_2] : memref<32x64xbf16, #tpu.memory_space<vmem>>, vector<32x64xbf16>
    %cst = arith.constant dense<0.000000e+00> : vector<8x64xf32>
    %2 = tpu.matmul %0, %1, %cst {dimension_numbers = #tpu.dot_dimension_numbers<[1], [0], [0], [1], [0, 0, 1, 1], [], []>} : vector<8x32xbf16>, vector<32x64xbf16>, vector<8x64xf32> -> vector<8x64xf32>
    %c0_3 = arith.constant 0 : index
    %c0_4 = arith.constant 0 : index
    %3 = vector.load %arg3[%c0_3, %c0_4] : memref<1x64xf32, #tpu.memory_space<vmem>>, vector<1x64xf32>
    %4 = vector.broadcast %3 : vector<1x64xf32> to vector<8x64xf32>
    %5 = arith.addf %2, %4 : vector<8x64xf32>
    %cst_5 = arith.constant 0.000000e+00 : f32
    %6 = vector.broadcast %cst_5 : f32 to vector<8x64xf32>
    %7 = arith.maximumf %5, %6 : vector<8x64xf32>
    %8 = arith.truncf %7 : vector<8x64xf32> to vector<8x64xbf16>
    %c0_6 = arith.constant 0 : index
    %c0_7 = arith.constant 0 : index
    %9 = vector.load %arg4[%c0_6, %c0_7] : memref<64x32xbf16, #tpu.memory_space<vmem>>, vector<64x32xbf16>
    %cst_8 = arith.constant dense<0.000000e+00> : vector<8x32xf32>
    %10 = tpu.matmul %8, %9, %cst_8 {dimension_numbers = #tpu.dot_dimension_numbers<[1], [0], [0], [1], [0, 0, 1, 1], [], []>} : vector<8x64xbf16>, vector<64x32xbf16>, vector<8x32xf32> -> vector<8x32xf32>
    %c0_9 = arith.constant 0 : index
    %c0_10 = arith.constant 0 : index
    %11 = vector.load %arg5[%c0_9, %c0_10] : memref<1x32xf32, #tpu.memory_space<vmem>>, vector<1x32xf32>
    %12 = vector.broadcast %11 : vector<1x32xf32> to vector<8x32xf32>
    %13 = arith.addf %10, %12 : vector<8x32xf32>
    %cst_11 = arith.constant 0.000000e+00 : f32
    %14 = vector.broadcast %cst_11 : f32 to vector<8x32xf32>
    %15 = arith.maximumf %13, %14 : vector<8x32xf32>
    %16 = arith.truncf %15 : vector<8x32xf32> to vector<8x32xbf16>
    %c0_12 = arith.constant 0 : index
    %c0_13 = arith.constant 0 : index
    %17 = vector.load %arg6[%c0_12, %c0_13] : memref<32x16xbf16, #tpu.memory_space<vmem>>, vector<32x16xbf16>
    %cst_14 = arith.constant dense<0.000000e+00> : vector<8x16xf32>
    %18 = tpu.matmul %16, %17, %cst_14 {dimension_numbers = #tpu.dot_dimension_numbers<[1], [0], [0], [1], [0, 0, 1, 1], [], []>} : vector<8x32xbf16>, vector<32x16xbf16>, vector<8x16xf32> -> vector<8x16xf32>
    %c0_15 = arith.constant 0 : index
    %c0_16 = arith.constant 0 : index
    %19 = vector.load %arg7[%c0_15, %c0_16] : memref<1x16xf32, #tpu.memory_space<vmem>>, vector<1x16xf32>
    %20 = vector.broadcast %19 : vector<1x16xf32> to vector<8x16xf32>
    %21 = arith.addf %18, %20 : vector<8x16xf32>
    %c0_17 = arith.constant 0 : index
    %c0_18 = arith.constant 0 : index
    %22 = vector.load %arg8[%c0_17, %c0_18] : memref<8x16xf32, #tpu.memory_space<vmem>>, vector<8x16xf32>
    tpu.vector_store %arg8[%c0_17, %c0_18], %21 {strides = array<i32>} : memref<8x16xf32, #tpu.memory_space<vmem>>, vector<8x16xf32>,
    return
  }
  func.func @transform_0(%arg0: i32) -> (i32, i32) {
    %c0_i32 = arith.constant 0 : i32
    %c0_i32_0 = arith.constant 0 : i32
    return %arg0, %c0_i32 : i32, i32
  }
  func.func @transform_1(%arg0: i32) -> (i32, i32) {
    %c0_i32 = arith.constant 0 : i32
    %c0_i32_0 = arith.constant 0 : i32
    %c0_i32_1 = arith.constant 0 : i32
    return %c0_i32, %c0_i32_0 : i32, i32
  }
  func.func @transform_2(%arg0: i32) -> (i32, i32) {
    %c0_i32 = arith.constant 0 : i32
    %c0_i32_0 = arith.constant 0 : i32
    %c0_i32_1 = arith.constant 0 : i32
    return %c0_i32, %c0_i32_0 : i32, i32
  }
  func.func @transform_3(%arg0: i32) -> (i32, i32) {
    %c0_i32 = arith.constant 0 : i32
    %c0_i32_0 = arith.constant 0 : i32
    %c0_i32_1 = arith.constant 0 : i32
    return %c0_i32, %c0_i32_0 : i32, i32
  }
  func.func @transform_4(%arg0: i32) -> (i32, i32) {
    %c0_i32 = arith.constant 0 : i32
    %c0_i32_0 = arith.constant 0 : i32
    %c0_i32_1 = arith.constant 0 : i32
    return %c0_i32, %c0_i32_0 : i32, i32
  }
  func.func @transform_5(%arg0: i32) -> (i32, i32) {
    %c0_i32 = arith.constant 0 : i32
    %c0_i32_0 = arith.constant 0 : i32
    %c0_i32_1 = arith.constant 0 : i32
    return %c0_i32, %c0_i32_0 : i32, i32
  }
  func.func @transform_6(%arg0: i32) -> (i32, i32) {
    %c0_i32 = arith.constant 0 : i32
    %c0_i32_0 = arith.constant 0 : i32
    %c0_i32_1 = arith.constant 0 : i32
    return %c0_i32, %c0_i32_0 : i32, i32
  }
  func.func @transform_7(%arg0: i32) -> (i32, i32) {
    %c0_i32 = arith.constant 0 : i32
    %c0_i32_0 = arith.constant 0 : i32
    return %arg0, %c0_i32 : i32, i32
  }
}

</mosaic_0001>

<bundles_post_ra>
// kernel: mlp_pallas.1
= control target key start
LH: loop header
LB: loop body
LE: loop exit
PB: predicated region body
PF: predicated region fallthrough
CT: control target
= control target key end

     0   :  { %v351_v1 = vmov 0.0   ;;  %vm352_vm0 = vmmov 0   ;;  %vm52_vm1 = vcmask 261120   ;;  %s438_s0 = inlined_call_operand.vmem [shape: bf16[8,32], index: 0, kind: input, shape index: {}]   ;;  %s439_s1 = inlined_call_operand.vmem [shape: bf16[32,64], index: 1, kind: input, shape index: {}]   ;;  %s440_s2 = inlined_call_operand.vmem [shape: f32[1,64], index: 2, kind: input, shape index: {}]   ;;  %s441_s3 = inlined_call_operand.vmem [shape: bf16[64,32], index: 3, kind: input, shape index: {}]   ;;  %s442_s4 = inlined_call_operand.vmem [shape: f32[1,32], index: 4, kind: input, shape index: {}]   ;;  %s443_s5 = inlined_call_operand.vmem [shape: bf16[32,16], index: 5, kind: input, shape index: {}]   ;;  %s444_s6 = inlined_call_operand.vmem [shape: f32[1,16], index: 6, kind: input, shape index: {}]   ;;  %s445_s7 = inlined_call_operand.hbm [shape: f32[8,16], index: 7, kind: output, shape index: {}]  }
   0x1   :  { %v321_v0 = vld [vmem:[%s439_s1 + $0x8] sm:$0xff]   ;;  %290 = vmatprep.subr.bf16.mxu0 %v351_v1  ;;  %298 = vmatprep.subr.bf16.mxu1 %v351_v1  ;;  %v322_v2 = vld [vmem:[%s439_s1] sm:$0xff]   ;;  %v323_v3 = vld [vmem:[%s441_s3 + $0x18] sm:$0xff]  }
   0x2   :  { %291 = vmatpush3.bf16.msra.mxu0 %v321_v0  ;;  %294 = vmatprep.mubr.msk.bf16.mxu0 %vm352_vm0, %v351_v1  ;;  %v28_v4 = vld [vmem:[%s438_s0] sm:$0xf]  ;;  %v324_v5 = vld [vmem:[%s441_s3 + $0x10] sm:$0xff]  }
   0x3   :  { %292 = vmatprep.subr.bf16.mxu0 %v351_v1  ;;  %306 = vmatprep.mubr.msk.bf16.mxu1 %vm352_vm0, %v351_v1 }
   0x4   :  { %299 = vmatpush3.bf16.msra.mxu1 %v323_v3 }
   0x5   :  { %300 = vmatprep.subr.bf16.mxu1 %v351_v1 }
   0x6   :  { %293 = vmatpush3.bf16.msra.mxu0 %v322_v2 }
   0x7   :  { %310 = vmatprep.subr.bf16.mxu0 %v351_v1 }
   0x8   :  { %12 = vsyncpa [#allocation3], 0  ;;  %301 = vmatpush3.bf16.msra.mxu1 %v324_v5  ;;  %v325_v6 = vld [vmem:[%s441_s3 + $0x8] sm:$0xff]   ;;  %v326_v7 = vld [vmem:[%s441_s3] sm:$0xff]   ;;  %vm137_vm2 = vcmask 523264   ;;  %s353_s21 = smov [#allocation2]  }
   0x9   :  { %295 = vmatmul.mubr.msk.bf16.vlgmr.msra.gmra.mxu0 %vm52_vm1, %v28_v4  ;;  %302 = vmatprep.subr.bf16.mxu1 %v351_v1  ;;  %v327_v8 = vld [vmem:[%s443_s5 + $0x8] sm:$0xff]   ;;  %v265_v9 = vld [vmem:[%s440_s2] ss:$0 sm:$0xff]  ;;  %vm249_vm3 = vcmask 130048  }
   0xa   :  { %314 = vmatprep.mubr.msk.bf16.mxu0 %vm352_vm0, %v351_v1  ;;  %311 = vmatpush3.bf16.msra.mxu0 %v327_v8  ;;  %v328_v17 = vld [vmem:[%s443_s5] sm:$0xff]   ;;  %s257_s5 = sshll.u32 %s353_s21, 4  ;;  %s258_s5 = int_to_ptr.vmem [resolvable:$true] %s257_s5 }
   0xb   :  { %312 = vmatprep.subr.bf16.mxu0 %v351_v1  ;;  %v269_v18 = vld [vmem:[%s442_s4] ss:$0 sm:$0xff]  ;;  %s329_s4 = scalar_lea.vmem %s258_s5, 128  ;;  %p334_p1 = scmp.lt.s32.totalorder %s258_s5, %s258_s5 }
   0xc   :  { %303 = vmatpush3.bf16.msra.mxu1 %v325_v6  ;;  %v275_v26 = vld [vmem:[%s444_s6] ss:$0 sm:$0xff]  ;;  %p330_p0 = scmp.ne.s32.totalorder %s258_s5, %s329_s4  ;;  %p335_p2 = scmp.lt.s32.totalorder %s329_s4, %s329_s4 }
   0xd   :  { %304 = vmatprep.subr.bf16.mxu1 %v351_v1 }
   0xe   :  { %313 = vmatpush3.bf16.msra.mxu0 %v328_v17  ;;  %p336_p3 = por %p335_p2, %p334_p1 }
  0x10   :  { %305 = vmatpush3.bf16.msra.mxu1 %v326_v7  ;;  %p337_p4 = pnand %p336_p3, %p330_p0 }
  0xc9   :  { %v90_v10 = vpop.f32.mrf.mxu0 }
  0xca   :  { %v91_v11 = vadd.f32 %v265_v9, %v90_v10 }
  0xcb   :  { %v296_v12 = vpop.f32.mrf.mxu0 }
  0xcc   :  { %v96_v13 = vmax.f32 %v91_v11, 0.0 }
  0xcd   :  { %v93_v14 = vpop.f32.mrf.mxu0 }
  0xce   :  { %v97_v15 = vpack.c.bf16 %v96_v13, %v96_v13 }
  0xcf   :  { %v297_v16 = vpop.f32.mrf.mxu0 }
  0xd0   :  { %307 = vmatmul.mubr.msk.bf16.vlgmr.msra.gmra.mxu1 %vm137_vm2, %v97_v15 }
 0x190   :  { %v175_v19 = vpop.f32.mrf.mxu1 }
 0x191   :  { %v176_v20 = vadd.f32 %v269_v18, %v175_v19 }
 0x192   :  { %v308_v21 = vpop.f32.mrf.mxu1 }
 0x193   :  { %v181_v22 = vmax.f32 %v176_v20, 0.0 }
 0x194   :  { %v178_v23 = vpop.f32.mrf.mxu1 }
 0x195   :  { %v182_v24 = vpack.c.bf16 %v181_v22, %v181_v22 }
 0x196   :  { %v309_v25 = vpop.f32.mrf.mxu1 }
 0x197   :  { %315 = vmatmul.mubr.msk.bf16.vlgmr.msra.gmra.mxu0 %vm52_vm1, %v182_v24 }
 0x257   :  { %v243_v27 = vpop.f32.mrf.mxu0 }
 0x258   :  { %v244_v28 = vadd.f32 %v275_v26, %v243_v27 }
 0x259   :  { %v316_v29 = vpop.f32.mrf.mxu0 }
 0x25a   :  { %250 = vst.msk [vmem:[#allocation2] sm:$0xff] %vm249_vm3, %v244_v28 }
 0x25b   :  { %v246_v30 = vpop.f32.mrf.mxu0 }
 0x25c   :  { %340 = shalt.err (!%p337_p4)
}
 0x25d   :  { %260 = dma.vmem_to_hbm [thread:$0]  %s258_s5, 128, %s445_s7, [#allocation3]   ;;  %v317_v31 = vpop.f32.mrf.mxu0 }
 0x25e   :  { %349 = dma.done.wait [#allocation3], 128  }
 0x25f   :  { %350 = vsyncadd [#allocation3], 4294967168 }
 0x260   :  { %264 = vsyncpa [#allocation3], 1 }

</bundles_post_ra>
